<compile_context>
chip_gen: v7x
topology: tpu7x:2x2x1
jax: 0.10.0
libtpu: 0.0.40
codegen_flags: <defaults>
</compile_context>

<pallas_src>
import math

import jax
import jax.numpy as jnp
from jax.experimental import pallas as pl
from jax.experimental.pallas import tpu as pltpu


# ----------------------------------------------------------------------------
# helpers
# ----------------------------------------------------------------------------
def _round_up(x, m):
    return ((x + m - 1) // m) * m


def _pad_2d(a, rows, cols):
    pr, pc = rows - a.shape[0], cols - a.shape[1]
    if pr == 0 and pc == 0:
        return a
    return jnp.pad(a, ((0, pr), (0, pc)))


# ----------------------------------------------------------------------------
# kernels: grid = (M/tm, E/tn, V/tk); K (reduction over vocab) is innermost.
# The x tile is DMA'd once per (i,k) step and feeds BOTH MXU dots; the bias
# add + numerically-stable softplus epilogue is fused in-kernel.
# ----------------------------------------------------------------------------
def _kernel_acc_in_output(x_ref, wmu_ref, wsg_ref, bmu_ref, bsg_ref,
                          mu_ref, sg_ref):
    """f32 outputs: accumulate partial matmuls directly in the resident output
    blocks (no scratch, no finalize copy)."""
    k = pl.program_id(2)

    @pl.when(k == 0)
    def _init():
        mu_ref[...] = jnp.zeros_like(mu_ref)
        sg_ref[...] = jnp.zeros_like(sg_ref)

    x = x_ref[...]                                       # (tm, tk), loaded once
    mu_ref[...] += jnp.dot(x, wmu_ref[...], preferred_element_type=jnp.float32)
    sg_ref[...] += jnp.dot(x, wsg_ref[...], preferred_element_type=jnp.float32)

    @pl.when(k == pl.num_programs(2) - 1)
    def _finalize():
        mu_ref[...] = mu_ref[...] + bmu_ref[...]
        z = sg_ref[...] + bsg_ref[...]
        # stable softplus: max(z, 0) + log1p(exp(-|z|))   (EUP transcendentals)
        sg_ref[...] = jnp.maximum(z, 0.0) + jnp.log1p(jnp.exp(-jnp.abs(z)))


def _kernel_with_scratch(x_ref, wmu_ref, wsg_ref, bmu_ref, bsg_ref,
                         mu_ref, sg_ref, acc_mu, acc_sg):
    """Non-f32 outputs: f32 VMEM accumulators, cast in the finalize epilogue."""
    k = pl.program_id(2)

    @pl.when(k == 0)
    def _init():
        acc_mu[...] = jnp.zeros_like(acc_mu)
        acc_sg[...] = jnp.zeros_like(acc_sg)

    x = x_ref[...]
    acc_mu[...] += jnp.dot(x, wmu_ref[...], preferred_element_type=jnp.float32)
    acc_sg[...] += jnp.dot(x, wsg_ref[...], preferred_element_type=jnp.float32)

    @pl.when(k == pl.num_programs(2) - 1)
    def _finalize():
        mu = acc_mu[...] + bmu_ref[...]
        z = acc_sg[...] + bsg_ref[...]
        sp = jnp.maximum(z, 0.0) + jnp.log1p(jnp.exp(-jnp.abs(z)))
        mu_ref[...] = mu.astype(mu_ref.dtype)
        sg_ref[...] = sp.astype(sg_ref.dtype)


# ----------------------------------------------------------------------------
# wrapper
# ----------------------------------------------------------------------------
def probabilistic_embedding(input_ids, params, *,
                            tm=1024, tn=512, tk=512,
                            vmem_budget_bytes=32 * 1024 * 1024,
                            use_bf16=False):
    """input_ids: (..., vocab) f32 -> (mu, sigma), each (..., embed_dim)."""
    w_mu, b_mu = params["w_mu"], params["b_mu"]            # (V, E), (E,)
    w_sg, b_sg = params["w_sigma"], params["b_sigma"]

    out_dtype = input_ids.dtype
    lead = input_ids.shape[:-1]
    V = input_ids.shape[-1]
    E = w_mu.shape[1]
    M = int(math.prod(lead)) if lead else 1

    # ---- tile selection: biggest tiles within the VMEM budget; small
    # problems collapse to a single-shot grid=(1,1,1). tn covers the full
    # embedding dim when E <= tn so x is never re-streamed over an N axis.
    tm = min(tm, _round_up(M, 8))
    tn = min(tn, _round_up(E, 128))
    tk = min(tk, _round_up(V, 128))

    in_bytes = 2 if use_bf16 else jnp.dtype(input_ids.dtype).itemsize
    out_bytes = jnp.dtype(out_dtype).itemsize
    f32_out = (out_dtype == jnp.float32)

    def footprint(tm_, tk_, tn_):
        f = (2 * tm_ * tk_ * in_bytes            # x tile   (double-buffered)
             + 2 * 2 * tk_ * tn_ * in_bytes      # two weight tiles
             + 2 * 2 * tm_ * tn_ * out_bytes     # two output tiles
             + 2 * 2 * tn_ * 4)                  # two bias tiles
        if not f32_out:
            f += 2 * tm_ * tn_ * 4               # f32 accumulators
        return f

    while footprint(tm, tk, tn) > vmem_budget_bytes and tm > 8:
        tm = max(8, (tm // 2 // 8) * 8)
    while footprint(tm, tk, tn) > vmem_budget_bytes and tk > 128:
        tk = max(128, (tk // 2 // 128) * 128)

    # ---- pad to tile multiples (zero padding is exact for the matmuls;
    # padded rows/cols are sliced off afterwards).
    M_pad = _round_up(M, tm)
    V_pad = _round_up(V, tk)
    E_pad = _round_up(E, tn)

    compute_dtype = jnp.bfloat16 if use_bf16 else input_ids.dtype
    x2 = _pad_2d(input_ids.reshape(M, V).astype(compute_dtype), M_pad, V_pad)
    wmu2 = _pad_2d(w_mu.astype(compute_dtype), V_pad, E_pad)
    wsg2 = _pad_2d(w_sg.astype(compute_dtype), V_pad, E_pad)
    bmu2 = _pad_2d(b_mu.reshape(1, E).astype(jnp.float32), 1, E_pad)
    bsg2 = _pad_2d(b_sg.reshape(1, E).astype(jnp.float32), 1, E_pad)

    grid = (M_pad // tm, E_pad // tn, V_pad // tk)

    x_spec = pl.BlockSpec((tm, tk), lambda i, j, k: (i, k))
    w_spec = pl.BlockSpec((tk, tn), lambda i, j, k: (k, j))
    b_spec = pl.BlockSpec((1, tn), lambda i, j, k: (0, j))
    o_spec = pl.BlockSpec((tm, tn), lambda i, j, k: (i, j))

    cost = pl.CostEstimate(
        flops=4 * M_pad * V_pad * E_pad,                  # two matmuls
        transcendentals=2 * M_pad * E_pad,                # exp + log1p
        bytes_accessed=(x2.size * in_bytes
                        + 2 * wmu2.size * in_bytes
                        + 2 * bmu2.size * 4
                        + 2 * M_pad * E_pad * out_bytes))

    if f32_out:
        kernel = _kernel_acc_in_output
        scratch = []
    else:
        kernel = _kernel_with_scratch
        scratch = [pltpu.VMEM((tm, tn), jnp.float32),
                   pltpu.VMEM((tm, tn), jnp.float32)]

    mu, sigma = pl.pallas_call(
        kernel,
        out_shape=(jax.ShapeDtypeStruct((M_pad, E_pad), out_dtype),
                   jax.ShapeDtypeStruct((M_pad, E_pad), out_dtype)),
        grid=grid,
        in_specs=[x_spec, w_spec, w_spec, b_spec, b_spec],
        out_specs=(o_spec, o_spec),
        scratch_shapes=scratch,
        compiler_params=pltpu.CompilerParams(
            dimension_semantics=("parallel", "parallel", "arbitrary"),
            vmem_limit_bytes=vmem_budget_bytes + 16 * 1024 * 1024),
        cost_estimate=cost,
    )(x2, wmu2, wsg2, bmu2, bsg2)

    mu = mu[:M, :E].reshape(*lead, E)
    sigma = sigma[:M, :E].reshape(*lead, E)
    return mu, sigma


# ----------------------------------------------------------------------------
# Pure-JAX reference (mirrors the PyTorch forward exactly)
# ----------------------------------------------------------------------------
def reference_forward(input_ids, params):
    mu = input_ids @ params["w_mu"] + params["b_mu"]
    sigma = jax.nn.softplus(input_ids @ params["w_sigma"] + params["b_sigma"])
    return mu, sigma


def init_params(key, vocab_size, embedding_dim):
    """PyTorch nn.Linear-style init; weights stored as (in, out)."""
    k1, k2, k3, k4 = jax.random.split(key, 4)
    bound = 1.0 / (vocab_size ** 0.5)

    def u(k, shape):
        return jax.random.uniform(k, shape, jnp.float32, -bound, bound)

    return {
        "w_mu": u(k1, (vocab_size, embedding_dim)),
        "b_mu": u(k2, (embedding_dim,)),
        "w_sigma": u(k3, (vocab_size, embedding_dim)),
        "b_sigma": u(k4, (embedding_dim,)),
    }


if __name__ == "__main__":
    batch, seq_len, vocab_size, embedding_dim = 2, 8, 512, 256

    key = jax.random.PRNGKey(0)
    k_x, k_p = jax.random.split(key)
    # nn.Linear over vocab_size implies a dense (e.g. one-hot / soft) input.
    input_ids = jax.random.normal(k_x, (batch, seq_len, vocab_size), jnp.float32)
    params = init_params(k_p, vocab_size, embedding_dim)

    mu, sigma = probabilistic_embedding(input_ids, params)
    jax.block_until_ready((mu, sigma))

    ref_mu, ref_sigma = reference_forward(input_ids, params)
    assert mu.shape == (batch, seq_len, embedding_dim)
    assert sigma.shape == (batch, seq_len, embedding_dim)
    assert jnp.allclose(mu, ref_mu, atol=1e-4, rtol=1e-4), "mu mismatch"
    assert jnp.allclose(sigma, ref_sigma, atol=1e-4, rtol=1e-4), "sigma mismatch"
    assert bool(jnp.all(sigma > 0.0)), "softplus output must be positive"

    print("KERNEL_OK")
</pallas_src>

<mosaic_0001>
module attributes {stable_mosaic.version = 11 : i64} {
  func.func @_kernel_acc_in_output(%arg0: i32, %arg1: i32, %arg2: i32, %arg3: memref<16x512xf32, #tpu.memory_space<vmem>>, %arg4: memref<512x256xf32, #tpu.memory_space<vmem>>, %arg5: memref<512x256xf32, #tpu.memory_space<vmem>>, %arg6: memref<1x256xf32, #tpu.memory_space<vmem>>, %arg7: memref<1x256xf32, #tpu.memory_space<vmem>>, %arg8: memref<16x256xf32, #tpu.memory_space<vmem>>, %arg9: memref<16x256xf32, #tpu.memory_space<vmem>>) attributes {dimension_semantics = [#tpu.dimension_semantics<parallel>, #tpu.dimension_semantics<parallel>, #tpu.dimension_semantics<arbitrary>], iteration_bounds = array<i64: 1, 1, 1>, scalar_prefetch = 0 : i64, scratch_operands = 0 : i64, tpu.core_type = #tpu.core_type<tc>, window_params = [{transform_indices = @transform_0, window_bounds = array<i64: 16, 512>}, {transform_indices = @transform_1, window_bounds = array<i64: 512, 256>}, {transform_indices = @transform_2, window_bounds = array<i64: 512, 256>}, {transform_indices = @transform_3, window_bounds = array<i64: 1, 256>}, {transform_indices = @transform_4, window_bounds = array<i64: 1, 256>}, {transform_indices = @transform_5, window_bounds = array<i64: 16, 256>}, {transform_indices = @transform_6, window_bounds = array<i64: 16, 256>}]} {
    %c0_i32 = arith.constant 0 : i32
    %0 = arith.cmpi eq, %arg2, %c0_i32 : i32
    %1 = arith.extui %0 : i1 to i32
    %c0_i32_0 = arith.constant 0 : i32
    %2 = arith.cmpi ne, %1, %c0_i32_0 : i32
    scf.if %2 {
      %cst_17 = arith.constant 0.000000e+00 : f32
      %17 = vector.broadcast %cst_17 : f32 to vector<16x256xf32>
      %c0_18 = arith.constant 0 : index
      %c0_19 = arith.constant 0 : index
      %18 = vector.load %arg8[%c0_18, %c0_19] : memref<16x256xf32, #tpu.memory_space<vmem>>, vector<16x256xf32>
      tpu.vector_store %arg8[%c0_18, %c0_19], %17 {strides = array<i32>} : memref<16x256xf32, #tpu.memory_space<vmem>>, vector<16x256xf32>,
      %cst_20 = arith.constant 0.000000e+00 : f32
      %19 = vector.broadcast %cst_20 : f32 to vector<16x256xf32>
      %c0_21 = arith.constant 0 : index
      %c0_22 = arith.constant 0 : index
      %20 = vector.load %arg9[%c0_21, %c0_22] : memref<16x256xf32, #tpu.memory_space<vmem>>, vector<16x256xf32>
      tpu.vector_store %arg9[%c0_21, %c0_22], %19 {strides = array<i32>} : memref<16x256xf32, #tpu.memory_space<vmem>>, vector<16x256xf32>,
    } else {
    }
    %c0 = arith.constant 0 : index
    %c0_1 = arith.constant 0 : index
    %3 = vector.load %arg3[%c0, %c0_1] : memref<16x512xf32, #tpu.memory_space<vmem>>, vector<16x512xf32>
    %c0_2 = arith.constant 0 : index
    %c0_3 = arith.constant 0 : index
    %4 = vector.load %arg8[%c0_2, %c0_3] : memref<16x256xf32, #tpu.memory_space<vmem>>, vector<16x256xf32>
    %c0_4 = arith.constant 0 : index
    %c0_5 = arith.constant 0 : index
    %5 = vector.load %arg4[%c0_4, %c0_5] : memref<512x256xf32, #tpu.memory_space<vmem>>, vector<512x256xf32>
    %cst = arith.constant dense<0.000000e+00> : vector<16x256xf32>
    %6 = tpu.matmul %3, %5, %cst {dimension_numbers = #tpu.dot_dimension_numbers<[1], [0], [0], [1], [0, 0, 1, 1], [], []>} : vector<16x512xf32>, vector<512x256xf32>, vector<16x256xf32> -> vector<16x256xf32>
    %7 = arith.addf %4, %6 : vector<16x256xf32>
    %c0_6 = arith.constant 0 : index
    %c0_7 = arith.constant 0 : index
    %8 = vector.load %arg8[%c0_6, %c0_7] : memref<16x256xf32, #tpu.memory_space<vmem>>, vector<16x256xf32>
    tpu.vector_store %arg8[%c0_6, %c0_7], %7 {strides = array<i32>} : memref<16x256xf32, #tpu.memory_space<vmem>>, vector<16x256xf32>,
    %c0_8 = arith.constant 0 : index
    %c0_9 = arith.constant 0 : index
    %9 = vector.load %arg9[%c0_8, %c0_9] : memref<16x256xf32, #tpu.memory_space<vmem>>, vector<16x256xf32>
    %c0_10 = arith.constant 0 : index
    %c0_11 = arith.constant 0 : index
    %10 = vector.load %arg5[%c0_10, %c0_11] : memref<512x256xf32, #tpu.memory_space<vmem>>, vector<512x256xf32>
    %cst_12 = arith.constant dense<0.000000e+00> : vector<16x256xf32>
    %11 = tpu.matmul %3, %10, %cst_12 {dimension_numbers = #tpu.dot_dimension_numbers<[1], [0], [0], [1], [0, 0, 1, 1], [], []>} : vector<16x512xf32>, vector<512x256xf32>, vector<16x256xf32> -> vector<16x256xf32>
    %12 = arith.addf %9, %11 : vector<16x256xf32>
    %c0_13 = arith.constant 0 : index
    %c0_14 = arith.constant 0 : index
    %13 = vector.load %arg9[%c0_13, %c0_14] : memref<16x256xf32, #tpu.memory_space<vmem>>, vector<16x256xf32>
    tpu.vector_store %arg9[%c0_13, %c0_14], %12 {strides = array<i32>} : memref<16x256xf32, #tpu.memory_space<vmem>>, vector<16x256xf32>,
    %c0_i32_15 = arith.constant 0 : i32
    %14 = arith.cmpi eq, %arg2, %c0_i32_15 : i32
    %15 = arith.extui %14 : i1 to i32
    %c0_i32_16 = arith.constant 0 : i32
    %16 = arith.cmpi ne, %15, %c0_i32_16 : i32
    scf.if %16 {
      %c0_17 = arith.constant 0 : index
      %c0_18 = arith.constant 0 : index
      %17 = vector.load %arg8[%c0_17, %c0_18] : memref<16x256xf32, #tpu.memory_space<vmem>>, vector<16x256xf32>
      %c0_19 = arith.constant 0 : index
      %c0_20 = arith.constant 0 : index
      %18 = vector.load %arg6[%c0_19, %c0_20] : memref<1x256xf32, #tpu.memory_space<vmem>>, vector<1x256xf32>
      %19 = vector.broadcast %18 : vector<1x256xf32> to vector<16x256xf32>
      %20 = arith.addf %17, %19 : vector<16x256xf32>
      %c0_21 = arith.constant 0 : index
      %c0_22 = arith.constant 0 : index
      %21 = vector.load %arg8[%c0_21, %c0_22] : memref<16x256xf32, #tpu.memory_space<vmem>>, vector<16x256xf32>
      tpu.vector_store %arg8[%c0_21, %c0_22], %20 {strides = array<i32>} : memref<16x256xf32, #tpu.memory_space<vmem>>, vector<16x256xf32>,
      %c0_23 = arith.constant 0 : index
      %c0_24 = arith.constant 0 : index
      %22 = vector.load %arg9[%c0_23, %c0_24] : memref<16x256xf32, #tpu.memory_space<vmem>>, vector<16x256xf32>
      %c0_25 = arith.constant 0 : index
      %c0_26 = arith.constant 0 : index
      %23 = vector.load %arg7[%c0_25, %c0_26] : memref<1x256xf32, #tpu.memory_space<vmem>>, vector<1x256xf32>
      %24 = vector.broadcast %23 : vector<1x256xf32> to vector<16x256xf32>
      %25 = arith.addf %22, %24 : vector<16x256xf32>
      %cst_27 = arith.constant 0.000000e+00 : f32
      %26 = vector.broadcast %cst_27 : f32 to vector<16x256xf32>
      %27 = arith.maximumf %25, %26 : vector<16x256xf32>
      %28 = math.absf %25 : vector<16x256xf32>
      %cst_28 = arith.constant 0.000000e+00 : f32
      %29 = vector.broadcast %cst_28 : f32 to vector<16x256xf32>
      %30 = arith.subf %29, %28 : vector<16x256xf32>
      %31 = math.exp %30 : vector<16x256xf32>
      %32 = math.log1p %31 : vector<16x256xf32>
      %33 = arith.addf %27, %32 : vector<16x256xf32>
      %c0_29 = arith.constant 0 : index
      %c0_30 = arith.constant 0 : index
      %34 = vector.load %arg9[%c0_29, %c0_30] : memref<16x256xf32, #tpu.memory_space<vmem>>, vector<16x256xf32>
      tpu.vector_store %arg9[%c0_29, %c0_30], %33 {strides = array<i32>} : memref<16x256xf32, #tpu.memory_space<vmem>>, vector<16x256xf32>,
    } else {
    }
    return
  }
  func.func @transform_0(%arg0: i32, %arg1: i32, %arg2: i32) -> (i32, i32) {
    %c0_i32 = arith.constant 0 : i32
    return %arg0, %arg2 : i32, i32
  }
  func.func @transform_1(%arg0: i32, %arg1: i32, %arg2: i32) -> (i32, i32) {
    %c0_i32 = arith.constant 0 : i32
    return %arg2, %arg1 : i32, i32
  }
  func.func @transform_2(%arg0: i32, %arg1: i32, %arg2: i32) -> (i32, i32) {
    %c0_i32 = arith.constant 0 : i32
    return %arg2, %arg1 : i32, i32
  }
  func.func @transform_3(%arg0: i32, %arg1: i32, %arg2: i32) -> (i32, i32) {
    %c0_i32 = arith.constant 0 : i32
    %c0_i32_0 = arith.constant 0 : i32
    return %c0_i32, %arg1 : i32, i32
  }
  func.func @transform_4(%arg0: i32, %arg1: i32, %arg2: i32) -> (i32, i32) {
    %c0_i32 = arith.constant 0 : i32
    %c0_i32_0 = arith.constant 0 : i32
    return %c0_i32, %arg1 : i32, i32
  }
  func.func @transform_5(%arg0: i32, %arg1: i32, %arg2: i32) -> (i32, i32) {
    %c0_i32 = arith.constant 0 : i32
    return %arg0, %arg1 : i32, i32
  }
  func.func @transform_6(%arg0: i32, %arg1: i32, %arg2: i32) -> (i32, i32) {
    %c0_i32 = arith.constant 0 : i32
    return %arg0, %arg1 : i32, i32
  }
}

</mosaic_0001>

<bundles_post_ra>
// kernel: tpu_custom_call.1
= control target key start
LH: loop header
LB: loop body
LE: loop exit
PB: predicated region body
PF: predicated region fallthrough
CT: control target
= control target key end

     0   :  { %12 = vsyncpa [#allocation3], 0  ;;  %s1364_s0 = inlined_call_operand.hbm [shape: f32[16,512], index: 0, kind: input, shape index: {}]   ;;  %s1365_s1 = inlined_call_operand.hbm [shape: f32[512,256], index: 1, kind: input, shape index: {}]   ;;  %s1366_s2 = inlined_call_operand.hbm [shape: f32[512,256], index: 2, kind: input, shape index: {}]   ;;  %s1367_s3 = inlined_call_operand.vmem [shape: f32[1,256], index: 3, kind: input, shape index: {}]   ;;  %s1368_s4 = inlined_call_operand.vmem [shape: f32[1,256], index: 4, kind: input, shape index: {}]   ;;  %s1369_s5 = inlined_call_operand.hbm [shape: f32[16,256], index: 5, kind: output, shape index: {0}]   ;;  %s1370_s6 = inlined_call_operand.hbm [shape: f32[16,256], index: 6, kind: output, shape index: {1}]  }
   0x1   :  { %13 = vsyncpa [#allocation6], 0 }
   0x2   :  { %14 = vsyncpa [#allocation4], 0 }
   0x3   :  { %15 = vsyncpa [#allocation10], 0  ;;  %s1226_s21 = smov [#allocation5]   ;;  %s1108_s25 = scalar_lea.hbm %s1365_s1, 16384 }
   0x4   :  { %s33_s22 = sshll.u32 %s1226_s21, 4  ;;  %p1109_p0 = scmp.ne.s32.totalorder %s1365_s1, %s1108_s25  ;;  %s34_s22 = int_to_ptr.vmem [resolvable:$true] %s33_s22 }
   0x5   :  { %p1112_p1 = scmp.lt.u32.totalorder %s1108_s25, %s1365_s1 }
   0x7   :  { %p1114_p2 = pnand %p1112_p1, %p1109_p0 }
   0x9   :  { %1117 = shalt.err (!%p1114_p2)
}
   0xa   :  { %s1118_s30 = scalar_lea.vmem %s34_s22, 16384  ;;  %p1123_p4 = scmp.lt.s32.totalorder %s34_s22, %s34_s22 }
   0xb   :  { %p1119_p3 = scmp.ne.s32.totalorder %s34_s22, %s1118_s30  ;;  %p1124_p5 = scmp.lt.s32.totalorder %s1118_s30, %s1118_s30 }
   0xd   :  { %p1125_p6 = por %p1124_p5, %p1123_p4 }
   0xf   :  { %p1126_p7 = pnand %p1125_p6, %p1119_p3 }
  0x11   :  { %1129 = shalt.err (!%p1126_p7)
}
  0x12   :  { %s1227_s7 = smov 256   ;;  %s1228_s8 = smov 16  }
  0x13   :  { %39 = dma.hbm_to_vmem [thread:$0]  %s1365_s1, 16384, %s34_s22, [#allocation6], %s1227_s7, %s1227_s7, %s1228_s8  }
  0x14   :  { %s1229_s11 = smov [#allocation2]   ;;  %s1130_s15 = scalar_lea.hbm %s1364_s0, 1024 }
  0x15   :  { %s21_s12 = sshll.u32 %s1229_s11, 4  ;;  %p1131_p8 = scmp.ne.s32.totalorder %s1364_s0, %s1130_s15  ;;  %s22_s12 = int_to_ptr.vmem [resolvable:$true] %s21_s12 }
  0x16   :  { %p1134_p9 = scmp.lt.u32.totalorder %s1130_s15, %s1364_s0 }
  0x18   :  { %p1136_p10 = pnand %p1134_p9, %p1131_p8 }
  0x1a   :  { %1139 = shalt.err (!%p1136_p10)
}
  0x1b   :  { %s1140_s20 = scalar_lea.vmem %s22_s12, 1024  ;;  %p1145_p12 = scmp.lt.s32.totalorder %s22_s12, %s22_s12 }
  0x1c   :  { %p1141_p11 = scmp.ne.s32.totalorder %s22_s12, %s1140_s20  ;;  %p1146_p13 = scmp.lt.s32.totalorder %s1140_s20, %s1140_s20 }
  0x1e   :  { %p1147_p0 = por %p1146_p13, %p1145_p12 }
  0x20   :  { %p1148_p1 = pnand %p1147_p0, %p1141_p11 }
  0x22   :  { %1151 = shalt.err (!%p1148_p1)
}
  0x23   :  { %s1230_s1 = smov 512   ;;  %s1231_s21 = smov 32  }
  0x24   :  { %27 = dma.hbm_to_vmem [thread:$0]  %s1364_s0, 1024, %s22_s12, [#allocation3], %s1230_s1, %s1230_s1, %s1231_s21  }
  0x25   :  { %s1232_s24 = smov [#allocation7]   ;;  %s1152_s28 = scalar_lea.hbm %s1366_s2, 16384 }
  0x26   :  { %s45_s25 = sshll.u32 %s1232_s24, 4  ;;  %p1153_p2 = scmp.ne.s32.totalorder %s1366_s2, %s1152_s28  ;;  %s46_s25 = int_to_ptr.vmem [resolvable:$true] %s45_s25 }
  0x27   :  { %p1156_p3 = scmp.lt.u32.totalorder %s1152_s28, %s1366_s2 }
  0x29   :  { %p1158_p4 = pnand %p1156_p3, %p1153_p2 }
  0x2b   :  { %1161 = shalt.err (!%p1158_p4)
}
  0x2c   :  { %s1162_s11 = scalar_lea.vmem %s46_s25, 16384  ;;  %p1167_p6 = scmp.lt.s32.totalorder %s46_s25, %s46_s25 }
  0x2d   :  { %p1163_p5 = scmp.ne.s32.totalorder %s46_s25, %s1162_s11  ;;  %p1168_p7 = scmp.lt.s32.totalorder %s1162_s11, %s1162_s11 }
  0x2f   :  { %p1169_p8 = por %p1168_p7, %p1167_p6 }
  0x31   :  { %p1170_p9 = pnand %p1169_p8, %p1163_p5 }
  0x33   :  { %1173 = shalt.err (!%p1170_p9)
}
  0x34   :  { %51 = dma.hbm_to_vmem [thread:$0]  %s1366_s2, 16384, %s46_s25, [#allocation6], %s1227_s7, %s1227_s7, %s1228_s8  }
  0x35   :  { %1218 = dma.done.wait [#allocation3], 1024  }
  0x36   :  { %1219 = vsyncadd [#allocation3], 4294966272 }
  0x37   :  { %1220 = dma.done.wait [#allocation6], 32768  }
  0x38   :  { %1221 = vsyncadd [#allocation6], 4294934528  ;;  %v90_v0 = vld [vmem:[#allocation5 + $0x8] sm:$0xff]  ;;  %v92_v1 = vld [vmem:[#allocation5 + $0x18] sm:$0xff] }
  0x39   :  { %v384_v2 = vld [vmem:[#allocation7 + $0x8] sm:$0xff]  ;;  %v818_v3 = vpack.c.bf16 %v92_v1, %v90_v0  ;;  %v386_v4 = vld [vmem:[#allocation7 + $0x18] sm:$0xff]  ;;  %v89_v5 = vld [vmem:[#allocation5] sm:$0xff] }
  0x3a   :  { %v91_v6 = vld [vmem:[#allocation5 + $0x10] sm:$0xff]  ;;  %v946_v7 = vpack.c.bf16 %v386_v4, %v384_v2  ;;  %v383_v9 = vld [vmem:[#allocation7] sm:$0xff]  ;;  %v94_v11 = vld [vmem:[#allocation5 + $0x28] sm:$0xff] }
  0x3b   :  { %v820_v8 = vpack.c.bf16 %v91_v6, %v89_v5  ;;  %v385_v10 = vld [vmem:[#allocation7 + $0x10] sm:$0xff]  ;;  %819 = vmatprep.subr.bf16.mxu0 %v818_v3  ;;  %v96_v13 = vld [vmem:[#allocation5 + $0x38] sm:$0xff]  ;;  %v388_v14 = vld [vmem:[#allocation7 + $0x28] sm:$0xff] }
  0x3c   :  { %v948_v12 = vpack.c.bf16 %v385_v10, %v383_v9  ;;  %v390_v15 = vld [vmem:[#allocation7 + $0x38] sm:$0xff]  ;;  %947 = vmatprep.subr.bf16.mxu1 %v946_v7  ;;  %v822_v16 = vpack.c.bf16 %v96_v13, %v94_v11  ;;  %v93_v18 = vld [vmem:[#allocation5 + $0x20] sm:$0xff]  ;;  %v95_v19 = vld [vmem:[#allocation5 + $0x30] sm:$0xff] }
  0x3d   :  { %821 = vmatpush1.bf16.msra.mxu0 %v820_v8  ;;  %v950_v17 = vpack.c.bf16 %v390_v15, %v388_v14  ;;  %v387_v20 = vld [vmem:[#allocation7 + $0x20] sm:$0xff]  ;;  %v824_v21 = vpack.c.bf16 %v95_v19, %v93_v18  ;;  %v389_v22 = vld [vmem:[#allocation7 + $0x30] sm:$0xff]  ;;  %v98_v23 = vld [vmem:[#allocation5 + $0x48] sm:$0xff] }
  0x3e   :  { %949 = vmatpush1.bf16.msra.mxu1 %v948_v12  ;;  %v100_v24 = vld [vmem:[#allocation5 + $0x58] sm:$0xff]  ;;  %823 = vmatprep.subr.bf16.mxu0 %v822_v16  ;;  %v952_v25 = vpack.c.bf16 %v389_v22, %v387_v20  ;;  %v392_v27 = vld [vmem:[#allocation7 + $0x48] sm:$0xff]  ;;  %v97_v29 = vld [vmem:[#allocation5 + $0x40] sm:$0xff] }
  0x3f   :  { %951 = vmatprep.subr.bf16.mxu1 %v950_v17  ;;  %v826_v26 = vpack.c.bf16 %v100_v24, %v98_v23  ;;  %v394_v28 = vld [vmem:[#allocation7 + $0x58] sm:$0xff]  ;;  %v99_v31 = vld [vmem:[#allocation5 + $0x50] sm:$0xff]  ;;  %v391_v32 = vld [vmem:[#allocation7 + $0x40] sm:$0xff] }
  0x40   :  { %v954_v30 = vpack.c.bf16 %v394_v28, %v392_v27  ;;  %v393_v33 = vld [vmem:[#allocation7 + $0x50] sm:$0xff]  ;;  %v828_v34 = vpack.c.bf16 %v99_v31, %v97_v29  ;;  %v102_v35 = vld [vmem:[#allocation5 + $0x68] sm:$0xff]  ;;  %v104_v36 = vld [vmem:[#allocation5 + $0x78] sm:$0xff] }
  0x41   :  { %825 = vmatpush1.bf16.msra.mxu0 %v824_v21  ;;  %v396_v37 = vld [vmem:[#allocation7 + $0x68] sm:$0xff]  ;;  %v956_v38 = vpack.c.bf16 %v393_v33, %v391_v32  ;;  %v830_v39 = vpack.c.bf16 %v104_v36, %v102_v35  ;;  %v398_v40 = vld [vmem:[#allocation7 + $0x78] sm:$0xff]  ;;  %v101_v41 = vld [vmem:[#allocation5 + $0x60] sm:$0xff] }
  0x42   :  { %953 = vmatpush1.bf16.msra.mxu1 %v952_v25  ;;  %827 = vmatprep.subr.bf16.mxu0 %v826_v26  ;;  %v103_v42 = vld [vmem:[#allocation5 + $0x70] sm:$0xff]  ;;  %v958_v43 = vpack.c.bf16 %v398_v40, %v396_v37  ;;  %v395_v44 = vld [vmem:[#allocation7 + $0x60] sm:$0xff]  ;;  %v106_v46 = vld [vmem:[#allocation5 + $0x88] sm:$0xff] }
  0x43   :  { %955 = vmatprep.subr.bf16.mxu1 %v954_v30  ;;  %v397_v45 = vld [vmem:[#allocation7 + $0x70] sm:$0xff]  ;;  %v108_v47 = vld [vmem:[#allocation5 + $0x98] sm:$0xff]  ;;  %v400_v48 = vld [vmem:[#allocation7 + $0x88] sm:$0xff]  ;;  %v832_v50 = vpack.c.bf16 %v103_v42, %v101_v41 }
  0x44   :  { %v402_v49 = vld [vmem:[#allocation7 + $0x98] sm:$0xff]  ;;  %v960_v51 = vpack.c.bf16 %v397_v45, %v395_v44  ;;  %v834_v52 = vpack.c.bf16 %v108_v47, %v106_v46  ;;  %v105_v53 = vld [vmem:[#allocation5 + $0x80] sm:$0xff]  ;;  %v107_v54 = vld [vmem:[#allocation5 + $0x90] sm:$0xff] }
  0x45   :  { %829 = vmatpush1.bf16.msra.mxu0 %v828_v34  ;;  %v399_v55 = vld [vmem:[#allocation7 + $0x80] sm:$0xff]  ;;  %v962_v56 = vpack.c.bf16 %v402_v49, %v400_v48  ;;  %v401_v57 = vld [vmem:[#allocation7 + $0x90] sm:$0xff]  ;;  %v110_v58 = vld [vmem:[#allocation5 + $0xa8] sm:$0xff]  ;;  %v836_v62 = vpack.c.bf16 %v107_v54, %v105_v53 }
  0x46   :  { %957 = vmatpush1.bf16.msra.mxu1 %v956_v38  ;;  %831 = vmatprep.subr.bf16.mxu0 %v830_v39  ;;  %v112_v59 = vld [vmem:[#allocation5 + $0xb8] sm:$0xff]  ;;  %v404_v60 = vld [vmem:[#allocation7 + $0xa8] sm:$0xff]  ;;  %v964_v63 = vpack.c.bf16 %v401_v57, %v399_v55  ;;  %v109_v1 = vld [vmem:[#allocation5 + $0xa0] sm:$0xff] }
  0x47   :  { %959 = vmatprep.subr.bf16.mxu1 %v958_v43  ;;  %v406_v61 = vld [vmem:[#allocation7 + $0xb8] sm:$0xff]  ;;  %v838_v0 = vpack.c.bf16 %v112_v59, %v110_v58  ;;  %v111_v2 = vld [vmem:[#allocation5 + $0xb0] sm:$0xff]  ;;  %v403_v3 = vld [vmem:[#allocation7 + $0xa0] sm:$0xff] }
  0x48   :  { %v966_v4 = vpack.c.bf16 %v406_v61, %v404_v60  ;;  %v405_v5 = vld [vmem:[#allocation7 + $0xb0] sm:$0xff]  ;;  %v114_v6 = vld [vmem:[#allocation5 + $0xc8] sm:$0xff]  ;;  %v116_v7 = vld [vmem:[#allocation5 + $0xd8] sm:$0xff]  ;;  %v840_v10 = vpack.c.bf16 %v111_v2, %v109_v1 }
  0x49   :  { %833 = vmatpush1.bf16.msra.mxu0 %v832_v50  ;;  %v408_v8 = vld [vmem:[#allocation7 + $0xc8] sm:$0xff]  ;;  %v410_v9 = vld [vmem:[#allocation7 + $0xd8] sm:$0xff]  ;;  %v968_v11 = vpack.c.bf16 %v405_v5, %v403_v3  ;;  %v842_v12 = vpack.c.bf16 %v116_v7, %v114_v6  ;;  %v113_v13 = vld [vmem:[#allocation5 + $0xc0] sm:$0xff] }
  0x4a   :  { %961 = vmatpush1.bf16.msra.mxu1 %v960_v51  ;;  %835 = vmatprep.subr.bf16.mxu0 %v834_v52  ;;  %v115_v14 = vld [vmem:[#allocation5 + $0xd0] sm:$0xff]  ;;  %v407_v15 = vld [vmem:[#allocation7 + $0xc0] sm:$0xff]  ;;  %v970_v16 = vpack.c.bf16 %v410_v9, %v408_v8  ;;  %v118_v18 = vld [vmem:[#allocation5 + $0xe8] sm:$0xff] }
  0x4b   :  { %963 = vmatprep.subr.bf16.mxu1 %v962_v56  ;;  %v409_v17 = vld [vmem:[#allocation7 + $0xd0] sm:$0xff]  ;;  %v120_v19 = vld [vmem:[#allocation5 + $0xf8] sm:$0xff]  ;;  %v412_v20 = vld [vmem:[#allocation7 + $0xe8] sm:$0xff]  ;;  %v844_v22 = vpack.c.bf16 %v115_v14, %v113_v13 }
  0x4c   :  { %v414_v21 = vld [vmem:[#allocation7 + $0xf8] sm:$0xff]  ;;  %v972_v23 = vpack.c.bf16 %v409_v17, %v407_v15  ;;  %v846_v24 = vpack.c.bf16 %v120_v19, %v118_v18  ;;  %v117_v25 = vld [vmem:[#allocation5 + $0xe0] sm:$0xff]  ;;  %v119_v26 = vld [vmem:[#allocation5 + $0xf0] sm:$0xff] }
  0x4d   :  { %837 = vmatpush1.bf16.msra.mxu0 %v836_v62  ;;  %v411_v27 = vld [vmem:[#allocation7 + $0xe0] sm:$0xff]  ;;  %v974_v28 = vpack.c.bf16 %v414_v21, %v412_v20  ;;  %v413_v29 = vld [vmem:[#allocation7 + $0xf0] sm:$0xff]  ;;  %v122_v30 = vld [vmem:[#allocation5 + $0x108] sm:$0xff]  ;;  %v848_v34 = vpack.c.bf16 %v119_v26, %v117_v25 }
  0x4e   :  { %965 = vmatpush1.bf16.msra.mxu1 %v964_v63  ;;  %839 = vmatprep.subr.bf16.mxu0 %v838_v0  ;;  %v124_v31 = vld [vmem:[#allocation5 + $0x118] sm:$0xff]  ;;  %v416_v32 = vld [vmem:[#allocation7 + $0x108] sm:$0xff]  ;;  %v976_v35 = vpack.c.bf16 %v413_v29, %v411_v27  ;;  %v121_v37 = vld [vmem:[#allocation5 + $0x100] sm:$0xff] }
  0x4f   :  { %967 = vmatprep.subr.bf16.mxu1 %v966_v4  ;;  %v418_v33 = vld [vmem:[#allocation7 + $0x118] sm:$0xff]  ;;  %v850_v36 = vpack.c.bf16 %v124_v31, %v122_v30  ;;  %v123_v38 = vld [vmem:[#allocation5 + $0x110] sm:$0xff]  ;;  %v415_v39 = vld [vmem:[#allocation7 + $0x100] sm:$0xff] }
  0x50   :  { %v978_v40 = vpack.c.bf16 %v418_v33, %v416_v32  ;;  %v417_v41 = vld [vmem:[#allocation7 + $0x110] sm:$0xff]  ;;  %v126_v42 = vld [vmem:[#allocation5 + $0x128] sm:$0xff]  ;;  %v128_v43 = vld [vmem:[#allocation5 + $0x138] sm:$0xff]  ;;  %v852_v46 = vpack.c.bf16 %v123_v38, %v121_v37 }
  0x51   :  { %841 = vmatpush1.bf16.msra.mxu0 %v840_v10  ;;  %v420_v44 = vld [vmem:[#allocation7 + $0x128] sm:$0xff]  ;;  %v422_v45 = vld [vmem:[#allocation7 + $0x138] sm:$0xff]  ;;  %v980_v47 = vpack.c.bf16 %v417_v41, %v415_v39  ;;  %v854_v48 = vpack.c.bf16 %v128_v43, %v126_v42  ;;  %v125_v49 = vld [vmem:[#allocation5 + $0x120] sm:$0xff] }
  0x52   :  { %969 = vmatpush1.bf16.msra.mxu1 %v968_v11  ;;  %843 = vmatprep.subr.bf16.mxu0 %v842_v12  ;;  %v127_v50 = vld [vmem:[#allocation5 + $0x130] sm:$0xff]  ;;  %v419_v51 = vld [vmem:[#allocation7 + $0x120] sm:$0xff]  ;;  %v982_v52 = vpack.c.bf16 %v422_v45, %v420_v44  ;;  %v130_v54 = vld [vmem:[#allocation5 + $0x148] sm:$0xff] }
  0x53   :  { %971 = vmatprep.subr.bf16.mxu1 %v970_v16  ;;  %v421_v53 = vld [vmem:[#allocation7 + $0x130] sm:$0xff]  ;;  %v132_v55 = vld [vmem:[#allocation5 + $0x158] sm:$0xff]  ;;  %v424_v56 = vld [vmem:[#allocation7 + $0x148] sm:$0xff]  ;;  %v856_v58 = vpack.c.bf16 %v127_v50, %v125_v49 }
  0x54   :  { %v426_v57 = vld [vmem:[#allocation7 + $0x158] sm:$0xff]  ;;  %v984_v59 = vpack.c.bf16 %v421_v53, %v419_v51  ;;  %v858_v60 = vpack.c.bf16 %v132_v55, %v130_v54  ;;  %v129_v61 = vld [vmem:[#allocation5 + $0x140] sm:$0xff]  ;;  %v131_v62 = vld [vmem:[#allocation5 + $0x150] sm:$0xff] }
  0x55   :  { %845 = vmatpush1.bf16.msra.mxu0 %v844_v22  ;;  %v423_v63 = vld [vmem:[#allocation7 + $0x140] sm:$0xff]  ;;  %v986_v0 = vpack.c.bf16 %v426_v57, %v424_v56  ;;  %v425_v1 = vld [vmem:[#allocation7 + $0x150] sm:$0xff]  ;;  %v134_v2 = vld [vmem:[#allocation5 + $0x168] sm:$0xff]  ;;  %v860_v6 = vpack.c.bf16 %v131_v62, %v129_v61 }
  0x56   :  { %973 = vmatpush1.bf16.msra.mxu1 %v972_v23  ;;  %847 = vmatprep.subr.bf16.mxu0 %v846_v24  ;;  %v136_v3 = vld [vmem:[#allocation5 + $0x178] sm:$0xff]  ;;  %v428_v4 = vld [vmem:[#allocation7 + $0x168] sm:$0xff]  ;;  %v133_v7 = vld [vmem:[#allocation5 + $0x160] sm:$0xff]  ;;  %v988_v8 = vpack.c.bf16 %v425_v1, %v423_v63 }
  0x57   :  { %975 = vmatprep.subr.bf16.mxu1 %v974_v28  ;;  %v430_v5 = vld [vmem:[#allocation7 + $0x178] sm:$0xff]  ;;  %v862_v9 = vpack.c.bf16 %v136_v3, %v134_v2  ;;  %v135_v10 = vld [vmem:[#allocation5 + $0x170] sm:$0xff]  ;;  %v427_v11 = vld [vmem:[#allocation7 + $0x160] sm:$0xff] }
  0x58   :  { %v429_v12 = vld [vmem:[#allocation7 + $0x170] sm:$0xff]  ;;  %v990_v13 = vpack.c.bf16 %v430_v5, %v428_v4  ;;  %v138_v14 = vld [vmem:[#allocation5 + $0x188] sm:$0xff]  ;;  %v140_v15 = vld [vmem:[#allocation5 + $0x198] sm:$0xff]  ;;  %v864_v19 = vpack.c.bf16 %v135_v10, %v133_v7 }
  0x59   :  { %849 = vmatpush1.bf16.msra.mxu0 %v848_v34  ;;  %v78_v16 = vld [vmem:[#allocation2 + $0x8] sm:$0xff]  ;;  %v434_v18 = vld [vmem:[#allocation7 + $0x198] sm:$0xff]  ;;  %v992_v20 = vpack.c.bf16 %v429_v12, %v427_v11  ;;  %v866_v21 = vpack.c.bf16 %v140_v15, %v138_v14  ;;  %v137_v22 = vld [vmem:[#allocation5 + $0x180] sm:$0xff] }
  0x5a   :  { %977 = vmatpush1.bf16.msra.mxu1 %v976_v35  ;;  %851 = vmatprep.subr.bf16.mxu0 %v850_v36  ;;  %v432_v17 = vld [vmem:[#allocation7 + $0x188] sm:$0xff]  ;;  %v139_v23 = vld [vmem:[#allocation5 + $0x190] sm:$0xff]  ;;  %v431_v24 = vld [vmem:[#allocation7 + $0x180] sm:$0xff] }
  0x5b   :  { %979 = vmatprep.subr.bf16.mxu1 %v978_v40  ;;  %281 = vmatprep.mubr.f32.mxu0 %v78_v16  ;;  %v994_v25 = vpack.c.bf16 %v434_v18, %v432_v17  ;;  %v433_v26 = vld [vmem:[#allocation7 + $0x190] sm:$0xff]  ;;  %v142_v27 = vld [vmem:[#allocation5 + $0x1a8] sm:$0xff]  ;;  %v144_v28 = vld [vmem:[#allocation5 + $0x1b8] sm:$0xff]  ;;  %v868_v31 = vpack.c.bf16 %v139_v23, %v137_v22 }
  0x5c   :  { %575 = vmatprep.mubr.f32.mxu1 %v78_v16  ;;  %v436_v29 = vld [vmem:[#allocation7 + $0x1a8] sm:$0xff]  ;;  %v438_v30 = vld [vmem:[#allocation7 + $0x1b8] sm:$0xff]  ;;  %v996_v32 = vpack.c.bf16 %v433_v26, %v431_v24  ;;  %v870_v33 = vpack.c.bf16 %v144_v28, %v142_v27  ;;  %v141_v34 = vld [vmem:[#allocation5 + $0x1a0] sm:$0xff] }
  0x5d   :  { %853 = vmatpush1.bf16.msra.mxu0 %v852_v46  ;;  %v143_v35 = vld [vmem:[#allocation5 + $0x1b0] sm:$0xff]  ;;  %v435_v36 = vld [vmem:[#allocation7 + $0x1a0] sm:$0xff]  ;;  %v998_v37 = vpack.c.bf16 %v438_v30, %v436_v29  ;;  %v146_v39 = vld [vmem:[#allocation5 + $0x1c8] sm:$0xff] }
  0x5e   :  { %981 = vmatpush1.bf16.msra.mxu1 %v980_v47  ;;  %855 = vmatprep.subr.bf16.mxu0 %v854_v48  ;;  %v437_v38 = vld [vmem:[#allocation7 + $0x1b0] sm:$0xff]  ;;  %v148_v40 = vld [vmem:[#allocation5 + $0x1d8] sm:$0xff]  ;;  %v440_v41 = vld [vmem:[#allocation7 + $0x1c8] sm:$0xff]  ;;  %v872_v43 = vpack.c.bf16 %v143_v35, %v141_v34 }
  0x5f   :  { %983 = vmatprep.subr.bf16.mxu1 %v982_v52  ;;  %v442_v42 = vld [vmem:[#allocation7 + $0x1d8] sm:$0xff]  ;;  %v1000_v44 = vpack.c.bf16 %v437_v38, %v435_v36  ;;  %v874_v45 = vpack.c.bf16 %v148_v40, %v146_v39  ;;  %v145_v46 = vld [vmem:[#allocation5 + $0x1c0] sm:$0xff]  ;;  %v147_v47 = vld [vmem:[#allocation5 + $0x1d0] sm:$0xff] }
  0x60   :  { %v439_v48 = vld [vmem:[#allocation7 + $0x1c0] sm:$0xff]  ;;  %v1002_v49 = vpack.c.bf16 %v442_v42, %v440_v41  ;;  %v441_v50 = vld [vmem:[#allocation7 + $0x1d0] sm:$0xff]  ;;  %v150_v51 = vld [vmem:[#allocation5 + $0x1e8] sm:$0xff]  ;;  %v876_v55 = vpack.c.bf16 %v147_v47, %v145_v46 }
  0x61   :  { %857 = vmatpush1.bf16.msra.mxu0 %v856_v58  ;;  %v152_v52 = vld [vmem:[#allocation5 + $0x1f8] sm:$0xff]  ;;  %v444_v53 = vld [vmem:[#allocation7 + $0x1e8] sm:$0xff]  ;;  %v1004_v56 = vpack.c.bf16 %v441_v50, %v439_v48  ;;  %v149_v58 = vld [vmem:[#allocation5 + $0x1e0] sm:$0xff] }
  0x62   :  { %985 = vmatpush1.bf16.msra.mxu1 %v984_v59  ;;  %859 = vmatprep.subr.bf16.mxu0 %v858_v60  ;;  %v446_v54 = vld [vmem:[#allocation7 + $0x1f8] sm:$0xff]  ;;  %v878_v57 = vpack.c.bf16 %v152_v52, %v150_v51  ;;  %v151_v59 = vld [vmem:[#allocation5 + $0x1f0] sm:$0xff]  ;;  %v443_v60 = vld [vmem:[#allocation7 + $0x1e0] sm:$0xff] }
  0x63   :  { %987 = vmatprep.subr.bf16.mxu1 %v986_v0  ;;  %v1006_v61 = vpack.c.bf16 %v446_v54, %v444_v53  ;;  %v445_v62 = vld [vmem:[#allocation7 + $0x1f0] sm:$0xff]  ;;  %v154_v63 = vld [vmem:[#allocation5 + $0x208] sm:$0xff]  ;;  %v156_v0 = vld [vmem:[#allocation5 + $0x218] sm:$0xff]  ;;  %v880_v3 = vpack.c.bf16 %v151_v59, %v149_v58 }
  0x64   :  { %v448_v1 = vld [vmem:[#allocation7 + $0x208] sm:$0xff]  ;;  %v450_v2 = vld [vmem:[#allocation7 + $0x218] sm:$0xff]  ;;  %v1008_v4 = vpack.c.bf16 %v445_v62, %v443_v60  ;;  %v882_v5 = vpack.c.bf16 %v156_v0, %v154_v63  ;;  %v155_v7 = vld [vmem:[#allocation5 + $0x210] sm:$0xff] }
  0x65   :  { %861 = vmatpush1.bf16.msra.mxu0 %v860_v6  ;;  %v153_v6 = vld [vmem:[#allocation5 + $0x200] sm:$0xff]  ;;  %v449_v10 = vld [vmem:[#allocation7 + $0x210] sm:$0xff]  ;;  %v158_v11 = vld [vmem:[#allocation5 + $0x228] sm:$0xff] }
  0x66   :  { %989 = vmatpush1.bf16.msra.mxu1 %v988_v8  ;;  %863 = vmatprep.subr.bf16.mxu0 %v862_v9  ;;  %v447_v8 = vld [vmem:[#allocation7 + $0x200] sm:$0xff]  ;;  %v1010_v9 = vpack.c.bf16 %v450_v2, %v448_v1  ;;  %v160_v12 = vld [vmem:[#allocation5 + $0x238] sm:$0xff]  ;;  %v884_v16 = vpack.c.bf16 %v155_v7, %v153_v6  ;;  %v453_v23 = vld [vmem:[#allocation7 + $0x230] sm:$0xff] }
  0x67   :  { %991 = vmatprep.subr.bf16.mxu1 %v990_v13  ;;  %v452_v13 = vld [vmem:[#allocation7 + $0x228] sm:$0xff]  ;;  %v454_v14 = vld [vmem:[#allocation7 + $0x238] sm:$0xff]  ;;  %v77_v15 = vld [vmem:[#allocation2] sm:$0xff]  ;;  %v1012_v17 = vpack.c.bf16 %v449_v10, %v447_v8  ;;  %v886_v18 = vpack.c.bf16 %v160_v12, %v158_v11 }
  0x68   :  { %v1014_v22 = vpack.c.bf16 %v454_v14, %v452_v13  ;;  %v162_v24 = vld [vmem:[#allocation5 + $0x248] sm:$0xff]  ;;  %v458_v27 = vld [vmem:[#allocation7 + $0x258] sm:$0xff]  ;;  %v457_v35 = vld [vmem:[#allocation7 + $0x250] sm:$0xff] }
  0x69   :  { %865 = vmatpush1.bf16.msra.mxu0 %v864_v19  ;;  %v157_v19 = vld [vmem:[#allocation5 + $0x220] sm:$0xff]  ;;  %v456_v26 = vld [vmem:[#allocation7 + $0x248] sm:$0xff]  ;;  %v462_v39 = vld [vmem:[#allocation7 + $0x278] sm:$0xff] }
  0x6a   :  { %993 = vmatpush1.bf16.msra.mxu1 %v992_v20  ;;  %867 = vmatprep.subr.bf16.mxu0 %v866_v21  ;;  %v159_v20 = vld [vmem:[#allocation5 + $0x230] sm:$0xff]  ;;  %v451_v21 = vld [vmem:[#allocation7 + $0x220] sm:$0xff]  ;;  %v1018_v34 = vpack.c.bf16 %v458_v27, %v456_v26  ;;  %v166_v36 = vld [vmem:[#allocation5 + $0x268] sm:$0xff] }
  0x6b   :  { %995 = vmatprep.subr.bf16.mxu1 %v994_v25  ;;  %v164_v25 = vld [vmem:[#allocation5 + $0x258] sm:$0xff]  ;;  %v888_v28 = vpack.c.bf16 %v159_v20, %v157_v19  ;;  %v1016_v29 = vpack.c.bf16 %v453_v23, %v451_v21  ;;  %v460_v38 = vld [vmem:[#allocation7 + $0x268] sm:$0xff]  ;;  %v461_v47 = vld [vmem:[#allocation7 + $0x270] sm:$0xff] }
  0x6c   :  { %v890_v30 = vpack.c.bf16 %v164_v25, %v162_v24  ;;  %v1022_v46 = vpack.c.bf16 %v462_v39, %v460_v38  ;;  %v170_v48 = vld [vmem:[#allocation5 + $0x288] sm:$0xff]  ;;  %v466_v51 = vld [vmem:[#allocation7 + $0x298] sm:$0xff]  ;;  %v465_v59 = vld [vmem:[#allocation7 + $0x290] sm:$0xff] }
  0x6d   :  { %869 = vmatpush1.bf16.msra.mxu0 %v868_v31  ;;  %v161_v31 = vld [vmem:[#allocation5 + $0x240] sm:$0xff]  ;;  %v464_v50 = vld [vmem:[#allocation7 + $0x288] sm:$0xff]  ;;  %v470_v63 = vld [vmem:[#allocation7 + $0x2b8] sm:$0xff] }
  0x6e   :  { %997 = vmatpush1.bf16.msra.mxu1 %v996_v32  ;;  %871 = vmatprep.subr.bf16.mxu0 %v870_v33  ;;  %v163_v32 = vld [vmem:[#allocation5 + $0x250] sm:$0xff]  ;;  %v455_v33 = vld [vmem:[#allocation7 + $0x240] sm:$0xff]  ;;  %v1026_v58 = vpack.c.bf16 %v466_v51, %v464_v50  ;;  %v174_v60 = vld [vmem:[#allocation5 + $0x2a8] sm:$0xff] }
  0x6f   :  { %999 = vmatprep.subr.bf16.mxu1 %v998_v37  ;;  %v168_v37 = vld [vmem:[#allocation5 + $0x278] sm:$0xff]  ;;  %v892_v40 = vpack.c.bf16 %v163_v32, %v161_v31  ;;  %v1020_v41 = vpack.c.bf16 %v457_v35, %v455_v33  ;;  %v468_v62 = vld [vmem:[#allocation7 + $0x2a8] sm:$0xff]  ;;  %v469_v7 = vld [vmem:[#allocation7 + $0x2b0] sm:$0xff] }
  0x70   :  { %v894_v42 = vpack.c.bf16 %v168_v37, %v166_v36  ;;  %v1030_v6 = vpack.c.bf16 %v470_v63, %v468_v62  ;;  %v178_v8 = vld [vmem:[#allocation5 + $0x2c8] sm:$0xff]  ;;  %v474_v11 = vld [vmem:[#allocation7 + $0x2d8] sm:$0xff]  ;;  %v177_v14 = vld [vmem:[#allocation5 + $0x2c0] sm:$0xff] }
  0x71   :  { %873 = vmatpush1.bf16.msra.mxu0 %v872_v43  ;;  %v165_v43 = vld [vmem:[#allocation5 + $0x260] sm:$0xff]  ;;  %v472_v10 = vld [vmem:[#allocation7 + $0x2c8] sm:$0xff]  ;;  %v473_v20 = vld [vmem:[#allocation7 + $0x2d0] sm:$0xff] }
  0x72   :  { %1001 = vmatpush1.bf16.msra.mxu1 %v1000_v44  ;;  %875 = vmatprep.subr.bf16.mxu0 %v874_v45  ;;  %v167_v44 = vld [vmem:[#allocation5 + $0x270] sm:$0xff]  ;;  %v459_v45 = vld [vmem:[#allocation7 + $0x260] sm:$0xff]  ;;  %v82_v12 = vld [vmem:[#allocation2 + $0x28] sm:$0xff]  ;;  %v1034_v21 = vpack.c.bf16 %v474_v11, %v472_v10 }
  0x73   :  { %1003 = vmatprep.subr.bf16.mxu1 %v1002_v49  ;;  %v172_v49 = vld [vmem:[#allocation5 + $0x298] sm:$0xff]  ;;  %v896_v52 = vpack.c.bf16 %v167_v44, %v165_v43  ;;  %v1024_v53 = vpack.c.bf16 %v461_v47, %v459_v45  ;;  %v471_v19 = vld [vmem:[#allocation7 + $0x2c0] sm:$0xff]  ;;  %v476_v25 = vld [vmem:[#allocation7 + $0x2e8] sm:$0xff] }
  0x74   :  { %v898_v54 = vpack.c.bf16 %v172_v49, %v170_v48  ;;  %v184_v23 = vld [vmem:[#allocation5 + $0x2f8] sm:$0xff]  ;;  %v183_v31 = vld [vmem:[#allocation5 + $0x2f0] sm:$0xff]  ;;  %v475_v32 = vld [vmem:[#allocation7 + $0x2e0] sm:$0xff] }
  0x75   :  { %877 = vmatpush1.bf16.msra.mxu0 %v876_v55  ;;  %v169_v55 = vld [vmem:[#allocation5 + $0x280] sm:$0xff]  ;;  %v80_v24 = vld [vmem:[#allocation2 + $0x18] sm:$0xff]  ;;  %v186_v35 = vld [vmem:[#allocation5 + $0x308] sm:$0xff] }
  0x76   :  { %1005 = vmatpush1.bf16.msra.mxu1 %v1004_v56  ;;  %879 = vmatprep.subr.bf16.mxu0 %v878_v57  ;;  %v171_v56 = vld [vmem:[#allocation5 + $0x290] sm:$0xff]  ;;  %v463_v57 = vld [vmem:[#allocation7 + $0x280] sm:$0xff]  ;;  %v478_v26 = vld [vmem:[#allocation7 + $0x2f8] sm:$0xff] }
  0x77   :  { %1007 = vmatprep.subr.bf16.mxu1 %v1006_v61  ;;  %v176_v61 = vld [vmem:[#allocation5 + $0x2b8] sm:$0xff]  ;;  %v900_v0 = vpack.c.bf16 %v171_v56, %v169_v55  ;;  %v1028_v1 = vpack.c.bf16 %v465_v59, %v463_v57  ;;  %v1038_v33 = vpack.c.bf16 %v478_v26, %v476_v25  ;;  %v480_v37 = vld [vmem:[#allocation7 + $0x308] sm:$0xff]  ;;  %v187_v43 = vld [vmem:[#allocation5 + $0x310] sm:$0xff] }
  0x78   :  { %v902_v2 = vpack.c.bf16 %v176_v61, %v174_v60  ;;  %v188_v36 = vld [vmem:[#allocation5 + $0x318] sm:$0xff]  ;;  %v479_v44 = vld [vmem:[#allocation7 + $0x300] sm:$0xff]  ;;  %v190_v47 = vld [vmem:[#allocation5 + $0x328] sm:$0xff] }
  0x79   :  { %881 = vmatpush1.bf16.msra.mxu0 %v880_v3  ;;  %v173_v3 = vld [vmem:[#allocation5 + $0x2a0] sm:$0xff]  ;;  %v482_v38 = vld [vmem:[#allocation7 + $0x318] sm:$0xff]  ;;  %v484_v49 = vld [vmem:[#allocation7 + $0x328] sm:$0xff] }
  0x7a   :  { %1009 = vmatpush1.bf16.msra.mxu1 %v1008_v4  ;;  %883 = vmatprep.subr.bf16.mxu0 %v882_v5  ;;  %v175_v4 = vld [vmem:[#allocation5 + $0x2b0] sm:$0xff]  ;;  %v467_v5 = vld [vmem:[#allocation7 + $0x2a0] sm:$0xff]  ;;  %v1042_v45 = vpack.c.bf16 %v482_v38, %v480_v37  ;;  %v192_v48 = vld [vmem:[#allocation5 + $0x338] sm:$0xff] }
  0x7b   :  { %1011 = vmatprep.subr.bf16.mxu1 %v1010_v9  ;;  %v180_v9 = vld [vmem:[#allocation5 + $0x2d8] sm:$0xff]  ;;  %v904_v13 = vpack.c.bf16 %v175_v4, %v173_v3  ;;  %v191_v55 = vld [vmem:[#allocation5 + $0x330] sm:$0xff]  ;;  %v483_v56 = vld [vmem:[#allocation7 + $0x320] sm:$0xff] }
  0x7c   :  { %282 = vmatmul.mubr.f32.vlgmr.msra.gmra.mrb[0].mxu0 %v77_v15  ;;  %v486_v50 = vld [vmem:[#allocation7 + $0x338] sm:$0xff]  ;;  %v194_v59 = vld [vmem:[#allocation5 + $0x348] sm:$0xff]  ;;  %v195_v3 = vld [vmem:[#allocation5 + $0x350] sm:$0xff] }
  0x7d   :  { %885 = vmatpush1.bf16.msra.mxu0 %v884_v16  ;;  %576 = vmatmul.mubr.f32.vlgmr.msra.gmra.mrb[0].mxu1 %v77_v15  ;;  %v81_v15 = vld [vmem:[#allocation2 + $0x20] sm:$0xff]  ;;  %v1032_v16 = vpack.c.bf16 %v469_v7, %v467_v5  ;;  %v1046_v57 = vpack.c.bf16 %v486_v50, %v484_v49  ;;  %v196_v60 = vld [vmem:[#allocation5 + $0x358] sm:$0xff]  ;;  %v488_v61 = vld [vmem:[#allocation7 + $0x348] sm:$0xff] }
  0x7e   :  { %1013 = vmatpush1.bf16.msra.mxu1 %v1012_v17  ;;  %887 = vmatprep.subr.bf16.mxu0 %v886_v18  ;;  %v906_v17 = vpack.c.bf16 %v180_v9, %v178_v8  ;;  %v179_v18 = vld [vmem:[#allocation5 + $0x2d0] sm:$0xff]  ;;  %v490_v62 = vld [vmem:[#allocation7 + $0x358] sm:$0xff]  ;;  %v487_v4 = vld [vmem:[#allocation7 + $0x340] sm:$0xff] }
  0x7f   :  { %1015 = vmatprep.subr.bf16.mxu1 %v1014_v22  ;;  %287 = vmatprep.mubr.f32.mxu0 %v82_v12  ;;  %v182_v22 = vld [vmem:[#allocation5 + $0x2e8] sm:$0xff]  ;;  %v908_v27 = vpack.c.bf16 %v179_v18, %v177_v14  ;;  %v1050_v5 = vpack.c.bf16 %v490_v62, %v488_v61  ;;  %v200_v8 = vld [vmem:[#allocation5 + $0x378] sm:$0xff]  ;;  %v197_v14 = vld [vmem:[#allocation5 + $0x360] sm:$0xff] }
  0x80   :  { %581 = vmatprep.mubr.f32.mxu1 %v82_v12  ;;  %288 = vmatmul.mubr.f32.gmra.mrb[2].mxu0 %v81_v15  ;;  %v198_v7 = vld [vmem:[#allocation5 + $0x368] sm:$0xff]  ;;  %v494_v10 = vld [vmem:[#allocation7 + $0x378] sm:$0xff]  ;;  %v493_v18 = vld [vmem:[#allocation7 + $0x370] sm:$0xff] }
  0x81   :  { %889 = vmatpush1.bf16.msra.mxu0 %v888_v28  ;;  %582 = vmatmul.mubr.f32.gmra.mrb[2].mxu1 %v81_v15  ;;  %v1036_v28 = vpack.c.bf16 %v473_v20, %v471_v19  ;;  %v492_v9 = vld [vmem:[#allocation7 + $0x368] sm:$0xff]  ;;  %v199_v15 = vld [vmem:[#allocation5 + $0x370] sm:$0xff]  ;;  %v204_v20 = vld [vmem:[#allocation5 + $0x398] sm:$0xff] }
  0x82   :  { %1017 = vmatpush1.bf16.msra.mxu1 %v1016_v29  ;;  %891 = vmatprep.subr.bf16.mxu0 %v890_v30  ;;  %v910_v29 = vpack.c.bf16 %v184_v23, %v182_v22  ;;  %v181_v30 = vld [vmem:[#allocation5 + $0x2e0] sm:$0xff]  ;;  %v202_v19 = vld [vmem:[#allocation5 + $0x388] sm:$0xff]  ;;  %v498_v22 = vld [vmem:[#allocation7 + $0x398] sm:$0xff]  ;;  %v928_v23 = vpack.c.bf16 %v199_v15, %v197_v14 }
  0x83   :  { %1019 = vmatprep.subr.bf16.mxu1 %v1018_v34  ;;  %358 = vmatprep.mubr.f32.mxu0 %v80_v24  ;;  %v477_v34 = vld [vmem:[#allocation7 + $0x2f0] sm:$0xff]  ;;  %v912_v39 = vpack.c.bf16 %v183_v31, %v181_v30  ;;  %v930_v25 = vpack.c.bf16 %v204_v20, %v202_v19  ;;  %v201_v26 = vld [vmem:[#allocation5 + $0x380] sm:$0xff]  ;;  %v206_v31 = vld [vmem:[#allocation5 + $0x3a8] sm:$0xff] }
  0x84   :  { %652 = vmatprep.mubr.f32.mxu1 %v80_v24  ;;  %v497_v30 = vld [vmem:[#allocation7 + $0x390] sm:$0xff]  ;;  %v205_v38 = vld [vmem:[#allocation5 + $0x3a0] sm:$0xff] }
  0x85   :  { %893 = vmatpush1.bf16.msra.mxu0 %v892_v40  ;;  %v1040_v40 = vpack.c.bf16 %v477_v34, %v475_v32  ;;  %v208_v32 = vld [vmem:[#allocation5 + $0x3b8] sm:$0xff]  ;;  %v209_v50 = vld [vmem:[#allocation5 + $0x3c0] sm:$0xff] }
  0x86   :  { %1021 = vmatpush1.bf16.msra.mxu1 %v1020_v41  ;;  %895 = vmatprep.subr.bf16.mxu0 %v894_v42  ;;  %v914_v41 = vpack.c.bf16 %v188_v36, %v186_v35  ;;  %v185_v42 = vld [vmem:[#allocation5 + $0x300] sm:$0xff]  ;;  %v502_v34 = vld [vmem:[#allocation7 + $0x3b8] sm:$0xff]  ;;  %v934_v37 = vpack.c.bf16 %v208_v32, %v206_v31 }
  0x87   :  { %1023 = vmatprep.subr.bf16.mxu1 %v1022_v46  ;;  %v481_v46 = vld [vmem:[#allocation7 + $0x310] sm:$0xff]  ;;  %v916_v51 = vpack.c.bf16 %v187_v43, %v185_v42  ;;  %v210_v43 = vld [vmem:[#allocation5 + $0x3c8] sm:$0xff]  ;;  %v213_v62 = vld [vmem:[#allocation5 + $0x3e0] sm:$0xff] }
  0x88   :  { %v501_v42 = vld [vmem:[#allocation7 + $0x3b0] sm:$0xff] }
  0x89   :  { %897 = vmatpush1.bf16.msra.mxu0 %v896_v52  ;;  %v1044_v52 = vpack.c.bf16 %v481_v46, %v479_v44  ;;  %v212_v44 = vld [vmem:[#allocation5 + $0x3d8] sm:$0xff] }
  0x8a   :  { %1025 = vmatpush1.bf16.msra.mxu1 %v1024_v53  ;;  %899 = vmatprep.subr.bf16.mxu0 %v898_v54  ;;  %v918_v53 = vpack.c.bf16 %v192_v48, %v190_v47  ;;  %v189_v54 = vld [vmem:[#allocation5 + $0x320] sm:$0xff]  ;;  %v506_v46 = vld [vmem:[#allocation7 + $0x3d8] sm:$0xff]  ;;  %v938_v49 = vpack.c.bf16 %v212_v44, %v210_v43 }
  0x8b   :  { %1027 = vmatprep.subr.bf16.mxu1 %v1026_v58  ;;  %v485_v58 = vld [vmem:[#allocation7 + $0x330] sm:$0xff]  ;;  %v920_v63 = vpack.c.bf16 %v191_v55, %v189_v54  ;;  %v214_v55 = vld [vmem:[#allocation5 + $0x3e8] sm:$0xff] }
  0x8c   :  { %v505_v54 = vld [vmem:[#allocation7 + $0x3d0] sm:$0xff] }
  0x8d   :  { %901 = vmatpush1.bf16.msra.mxu0 %v900_v0  ;;  %v1048_v0 = vpack.c.bf16 %v485_v58, %v483_v56  ;;  %v216_v56 = vld [vmem:[#allocation5 + $0x3f8] sm:$0xff] }
  0x8e   :  { %1029 = vmatpush1.bf16.msra.mxu1 %v1028_v1  ;;  %903 = vmatprep.subr.bf16.mxu0 %v902_v2  ;;  %v922_v1 = vpack.c.bf16 %v196_v60, %v194_v59  ;;  %v193_v2 = vld [vmem:[#allocation5 + $0x340] sm:$0xff]  ;;  %v510_v58 = vld [vmem:[#allocation7 + $0x3f8] sm:$0xff]  ;;  %v942_v61 = vpack.c.bf16 %v216_v56, %v214_v55 }
  0x8f   :  { %1031 = vmatprep.subr.bf16.mxu1 %v1030_v6  ;;  %v489_v6 = vld [vmem:[#allocation7 + $0x350] sm:$0xff]  ;;  %v924_v11 = vpack.c.bf16 %v195_v3, %v193_v2 }
  0x90   :  { %v1052_v12 = vpack.c.bf16 %v489_v6, %v487_v4  ;;  %v509_v2 = vld [vmem:[#allocation7 + $0x3f0] sm:$0xff]  ;;  %v84_v6 = vld [vmem:[#allocation2 + $0x38] sm:$0xff] }
  0x91   :  { %905 = vmatpush1.bf16.msra.mxu0 %v904_v13  ;;  %v926_v13 = vpack.c.bf16 %v200_v8, %v198_v7  ;;  %v83_v7 = vld [vmem:[#allocation2 + $0x30] sm:$0xff]  ;;  %v682_v8 = vlaneseq }
  0x92   :  { %1033 = vmatpush1.bf16.msra.mxu1 %v1032_v16  ;;  %907 = vmatprep.subr.bf16.mxu0 %v906_v17  ;;  %v491_v16 = vld [vmem:[#allocation7 + $0x360] sm:$0xff]  ;;  %v1054_v17 = vpack.c.bf16 %v494_v10, %v492_v9 }
  0x93   :  { %1035 = vmatprep.subr.bf16.mxu1 %v1034_v21  ;;  %v496_v21 = vld [vmem:[#allocation7 + $0x388] sm:$0xff]  ;;  %v1056_v24 = vpack.c.bf16 %v493_v18, %v491_v16  ;;  %v683_v9 = vshrl.u32 %v682_v8, 7 }
  0x95   :  { %909 = vmatpush1.bf16.msra.mxu0 %v908_v27  ;;  %v203_v27 = vld [vmem:[#allocation5 + $0x390] sm:$0xff]  ;;  %v684_v10 = vsub.s32 0, %v683_v9 }
  0x96   :  { %1037 = vmatpush1.bf16.msra.mxu1 %v1036_v28  ;;  %911 = vmatprep.subr.bf16.mxu0 %v910_v29  ;;  %v495_v28 = vld [vmem:[#allocation7 + $0x380] sm:$0xff]  ;;  %v1058_v29 = vpack.c.bf16 %v498_v22, %v496_v21  ;;  %v932_v35 = vpack.c.bf16 %v203_v27, %v201_v26 }
  0x97   :  { %1039 = vmatprep.subr.bf16.mxu1 %v1038_v33  ;;  %v500_v33 = vld [vmem:[#allocation7 + $0x3a8] sm:$0xff]  ;;  %v1060_v36 = vpack.c.bf16 %v497_v30, %v495_v28 }
  0x99   :  { %913 = vmatpush1.bf16.msra.mxu0 %v912_v39  ;;  %v207_v39 = vld [vmem:[#allocation5 + $0x3b0] sm:$0xff] }
  0x9a   :  { %1041 = vmatpush1.bf16.msra.mxu1 %v1040_v40  ;;  %915 = vmatprep.subr.bf16.mxu0 %v914_v41  ;;  %v499_v40 = vld [vmem:[#allocation7 + $0x3a0] sm:$0xff]  ;;  %v1062_v41 = vpack.c.bf16 %v502_v34, %v500_v33  ;;  %v936_v47 = vpack.c.bf16 %v207_v39, %v205_v38 }
  0x9b   :  { %1043 = vmatprep.subr.bf16.mxu1 %v1042_v45  ;;  %v504_v45 = vld [vmem:[#allocation7 + $0x3c8] sm:$0xff]  ;;  %v1064_v48 = vpack.c.bf16 %v501_v42, %v499_v40 }
  0x9d   :  { %917 = vmatpush1.bf16.msra.mxu0 %v916_v51  ;;  %v211_v51 = vld [vmem:[#allocation5 + $0x3d0] sm:$0xff] }
  0x9e   :  { %1045 = vmatpush1.bf16.msra.mxu1 %v1044_v52  ;;  %919 = vmatprep.subr.bf16.mxu0 %v918_v53  ;;  %v503_v52 = vld [vmem:[#allocation7 + $0x3c0] sm:$0xff]  ;;  %v1066_v53 = vpack.c.bf16 %v506_v46, %v504_v45  ;;  %v940_v59 = vpack.c.bf16 %v211_v51, %v209_v50 }
  0x9f   :  { %1047 = vmatprep.subr.bf16.mxu1 %v1046_v57  ;;  %v508_v57 = vld [vmem:[#allocation7 + $0x3e8] sm:$0xff]  ;;  %v1068_v60 = vpack.c.bf16 %v505_v54, %v503_v52 }
  0xa1   :  { %921 = vmatpush1.bf16.msra.mxu0 %v920_v63  ;;  %v215_v63 = vld [vmem:[#allocation5 + $0x3f0] sm:$0xff] }
  0xa2   :  { %1049 = vmatpush1.bf16.msra.mxu1 %v1048_v0  ;;  %923 = vmatprep.subr.bf16.mxu0 %v922_v1  ;;  %v1070_v0 = vpack.c.bf16 %v510_v58, %v508_v57  ;;  %v507_v1 = vld [vmem:[#allocation7 + $0x3e0] sm:$0xff]  ;;  %v944_v3 = vpack.c.bf16 %v215_v63, %v213_v62 }
  0xa3   :  { %1051 = vmatprep.subr.bf16.mxu1 %v1050_v5  ;;  %v1072_v4 = vpack.c.bf16 %v509_v2, %v507_v1  ;;  %v79_v5 = vld [vmem:[#allocation2 + $0x10] sm:$0xff] }
  0xa5   :  { %925 = vmatpush1.bf16.msra.mxu0 %v924_v11  ;;  %v680_v11 = vld [vmem:[%s1367_s3] sm:$0x3]  ;;  %s1233_s3 = smov [#allocation8]  }
  0xa6   :  { %1053 = vmatpush1.bf16.msra.mxu1 %v1052_v12  ;;  %927 = vmatprep.subr.bf16.mxu0 %v926_v13  ;;  %v688_v12 = vsub.s32 1, %v683_v9  ;;  %v704_v13 = vld [vmem:[%s1368_s4] sm:$0x3]  ;;  %v685_v14 = vrot.slane %v680_v11, %v684_v10  ;;  %s789_s16 = sshll.u32 %s1233_s3, 4  ;;  %s790_s16 = int_to_ptr.vmem [resolvable:$true] %s789_s16 }
  0xa7   :  { %1055 = vmatprep.subr.bf16.mxu1 %v1054_v17  ;;  %v709_v17 = vrot.slane %v704_v13, %v684_v10  ;;  %s1174_s4 = scalar_lea.vmem %s790_s16, 512  ;;  %p1179_p11 = scmp.lt.s32.totalorder %s790_s16, %s790_s16 }
  0xa8   :  { %v689_v16 = vrot.slane %v680_v11, %v688_v12  ;;  %v713_v20 = vrot.slane %v704_v13, %v688_v12  ;;  %p1175_p10 = scmp.ne.s32.totalorder %s790_s16, %s1174_s4  ;;  %p1180_p12 = scmp.lt.s32.totalorder %s1174_s4, %s1174_s4 }
  0xa9   :  { %929 = vmatpush1.bf16.msra.mxu0 %v928_v23 }
  0xaa   :  { %1057 = vmatpush1.bf16.msra.mxu1 %v1056_v24  ;;  %931 = vmatprep.subr.bf16.mxu0 %v930_v25  ;;  %p1181_p13 = por %p1180_p12, %p1179_p11 }
  0xab   :  { %1059 = vmatprep.subr.bf16.mxu1 %v1058_v29 }
  0xac   :  { %p1182_p0 = pnand %p1181_p13, %p1175_p10 }
  0xad   :  { %933 = vmatpush1.bf16.msra.mxu0 %v932_v35 }
  0xae   :  { %1061 = vmatpush1.bf16.msra.mxu1 %v1060_v36  ;;  %935 = vmatprep.subr.bf16.mxu0 %v934_v37 }
  0xaf   :  { %1063 = vmatprep.subr.bf16.mxu1 %v1062_v41 }
  0xb1   :  { %937 = vmatpush1.bf16.msra.mxu0 %v936_v47 }
  0xb2   :  { %1065 = vmatpush1.bf16.msra.mxu1 %v1064_v48  ;;  %939 = vmatprep.subr.bf16.mxu0 %v938_v49 }
  0xb3   :  { %1067 = vmatprep.subr.bf16.mxu1 %v1066_v53 }
  0xb5   :  { %941 = vmatpush1.bf16.msra.mxu0 %v940_v59 }
  0xb6   :  { %1069 = vmatpush1.bf16.msra.mxu1 %v1068_v60  ;;  %943 = vmatprep.subr.bf16.mxu0 %v942_v61 }
  0xb7   :  { %1071 = vmatprep.subr.bf16.mxu1 %v1070_v0 }
  0xb9   :  { %945 = vmatpush1.bf16.msra.mxu0 %v944_v3 }
  0xba   :  { %1073 = vmatpush1.bf16.msra.mxu1 %v1072_v4 }
  0xbc   :  { %359 = vmatmul.mubr.f32.vlgmr.msra.gmra.mrb[0].mxu0 %v79_v5 }
  0xbd   :  { %653 = vmatmul.mubr.f32.vlgmr.msra.gmra.mrb[0].mxu1 %v79_v5  ;;  %364 = vmatprep.mubr.f32.mxu0 %v84_v6 }
  0xbe   :  { %658 = vmatprep.mubr.f32.mxu1 %v84_v6 }
  0xc0   :  { %365 = vmatmul.mubr.f32.gmra.mrb[2].mxu0 %v83_v7 }
  0xc1   :  { %659 = vmatmul.mubr.f32.gmra.mrb[2].mxu1 %v83_v7 }
 0x18f   :  { %v360_v15 = vpop.f32.mrb[0].mxu0 }
 0x190   :  { %v654_v18 = vpop.f32.mrb[0].mxu1  ;;  %v362_v19 = vpop.f32.mrb[1].mxu0  ;;  %v692_v22 = vadd.f32 %v685_v14, %v360_v15 }
 0x191   :  { %v656_v21 = vpop.f32.mrb[1].mxu1  ;;  %v693_v24 = vadd.f32 %v689_v16, %v362_v19  ;;  %v1318_v25 = vadd.f32 %v709_v17, %v654_v18 }
 0x192   :  { %696 = vst [vmem:[#allocation8] sm:$0xff] %v692_v22  ;;  %v1320_v28 = vadd.f32 %v713_v20, %v656_v21 }
 0x193   :  { %v366_v23 = vpop.f32.mrb[2].mxu0  ;;  %697 = vst [vmem:[#allocation8 + $0x8] sm:$0xff] %v693_v24  ;;  %v724_v30 = vand.u32 2147483647, %v1318_v25 }
 0x194   :  { %v660_v26 = vpop.f32.mrb[2].mxu1  ;;  %v368_v27 = vpop.f32.mrb[3].mxu0  ;;  %v694_v31 = vadd.f32 %v685_v14, %v366_v23  ;;  %v725_v32 = vand.u32 2147483647, %v1320_v28 }
 0x195   :  { %v662_v29 = vpop.f32.mrb[3].mxu1  ;;  %v695_v33 = vadd.f32 %v689_v16, %v368_v27  ;;  %v1324_v34 = vadd.f32 %v709_v17, %v660_v26  ;;  %v728_v35 = vsub.f32 0.0, %v724_v30 }
 0x196   :  { %698 = vst [vmem:[#allocation8 + $0x10] sm:$0xff] %v694_v31  ;;  %v1326_v36 = vadd.f32 %v713_v20, %v662_v29  ;;  %v729_v37 = vsub.f32 0.0, %v725_v32 }
 0x197   :  { %699 = vst [vmem:[#allocation8 + $0x18] sm:$0xff] %v695_v33  ;;  %v726_v38 = vand.u32 2147483647, %v1324_v34  ;;  %v732_v39 = vmul.f32 1.442695, %v728_v35 }
 0x198   :  { %1185 = shalt.err (!%p1182_p0)
}
 0x199   :  { %s1186_s19 = scalar_lea.hbm %s1369_s5, 512 }
 0x19a   :  { %p1187_p1 = scmp.ne.s32.totalorder %s1369_s5, %s1186_s19  ;;  %p1190_p2 = scmp.lt.u32.totalorder %s1186_s19, %s1369_s5 }
 0x19c   :  { %p1192_p3 = pnand %p1190_p2, %p1187_p1 }
 0x19e   :  { %1195 = shalt.err (!%p1192_p3)
}
 0x19f   :  { %795 = dma.vmem_to_hbm [thread:$0]  %s790_s16, 512, %s1369_s5, [#allocation4], %s1227_s7, %s1227_s7, %s1228_s8   ;;  %v727_v40 = vand.u32 2147483647, %v1326_v36  ;;  %v730_v41 = vsub.f32 0.0, %v726_v38  ;;  %1092 = vpow2.f32 %v732_v39  ;;  %v720_v3 = vmax.f32 %v1318_v25, 0.0 }
 0x1a0   :  { %v734_v42 = vmul.f32 1.442695, %v729_v37  ;;  %v721_v11 = vmax.f32 %v1320_v28, 0.0  ;;  %v722_v14 = vmax.f32 %v1324_v34, 0.0  ;;  %s1234_s5 = smov [#allocation9]   ;;  %v723_v21 = vmax.f32 %v1326_v36, 0.0 }
 0x1a1   :  { %v731_v43 = vsub.f32 0.0, %v727_v40  ;;  %v736_v44 = vmul.f32 1.442695, %v730_v41  ;;  %s801_s25 = sshll.u32 %s1234_s5, 4  ;;  %s802_s25 = int_to_ptr.vmem [resolvable:$true] %s801_s25 }
 0x1a2   :  { %1094 = vpow2.f32 %v734_v42  ;;  %s1196_s26 = scalar_lea.vmem %s802_s25, 512  ;;  %p1201_p5 = scmp.lt.s32.totalorder %s802_s25, %s802_s25 }
 0x1a3   :  { %v738_v45 = vmul.f32 1.442695, %v731_v43  ;;  %1096 = vpow2.f32 %v736_v44  ;;  %p1197_p4 = scmp.ne.s32.totalorder %s802_s25, %s1196_s26  ;;  %p1202_p6 = scmp.lt.s32.totalorder %s1196_s26, %s1196_s26 }
 0x1a5   :  { %1098 = vpow2.f32 %v738_v45  ;;  %p1203_p7 = por %p1202_p6, %p1201_p5 }
 0x1a7   :  { %p1204_p8 = pnand %p1203_p7, %p1197_p4 }
 0x1a9   :  { %v1093_v46 = vpop.eup %1092 }
 0x1aa   :  { %v740_v47 = vadd.f32 1.0, %v1093_v46  ;;  %v743_v53 = vmul.f32 -0.5, %v1093_v46  ;;  %v746_v58 = vand.u32 2147483647, %v1093_v46 }
 0x1ac   :  { %v1095_v48 = vpop.eup %1094  ;;  %1100 = vlog2.f32 %v740_v47  ;;  %v744_v56 = vadd.f32 1.0, %v743_v53  ;;  %vm747_vm0 = vcmp.lt.f32.partialorder %v746_v58, 0.0004427343 }
 0x1ad   :  { %v749_v49 = vadd.f32 1.0, %v1095_v48  ;;  %v1097_v50 = vpop.eup %1096  ;;  %v752_v55 = vmul.f32 -0.5, %v1095_v48  ;;  %v755_v62 = vand.u32 2147483647, %v1095_v48 }
 0x1ae   :  { %v758_v52 = vadd.f32 1.0, %v1097_v50  ;;  %v761_v57 = vmul.f32 -0.5, %v1097_v50  ;;  %v745_v0 = vmul.f32 %v1093_v46, %v744_v56  ;;  %v764_v4 = vand.u32 2147483647, %v1097_v50 }
 0x1af   :  { %v1099_v51 = vpop.eup %1098  ;;  %1102 = vlog2.f32 %v749_v49  ;;  %v753_v60 = vadd.f32 1.0, %v752_v55  ;;  %vm756_vm1 = vcmp.lt.f32.partialorder %v755_v62, 0.0004427343 }
 0x1b0   :  { %v767_v54 = vadd.f32 1.0, %v1099_v51  ;;  %1104 = vlog2.f32 %v758_v52  ;;  %v770_v59 = vmul.f32 -0.5, %v1099_v51  ;;  %v762_v1 = vadd.f32 1.0, %v761_v57 }
 0x1b1   :  { %v754_v8 = vmul.f32 %v1095_v48, %v753_v60  ;;  %v773_v9 = vand.u32 2147483647, %v1099_v51  ;;  %vm765_vm2 = vcmp.lt.f32.partialorder %v764_v4, 0.0004427343 }
 0x1b2   :  { %1106 = vlog2.f32 %v767_v54  ;;  %v771_v5 = vadd.f32 1.0, %v770_v59  ;;  %v763_v17 = vmul.f32 %v1097_v50, %v762_v1 }
 0x1b3   :  { %vm774_vm3 = vcmp.lt.f32.partialorder %v773_v9, 0.0004427343 }
 0x1b4   :  { %v772_v19 = vmul.f32 %v1099_v51, %v771_v5 }
 0x1b6   :  { %v1101_v61 = vpop.eup %1100 }
 0x1b7   :  { %v742_v63 = vmul.f32 0.6931472, %v1101_v61 }
 0x1b9   :  { %v1103_v2 = vpop.eup %1102  ;;  %v748_v6 = vsel %vm747_vm0, %v745_v0, %v742_v63 }
 0x1ba   :  { %v751_v7 = vmul.f32 0.6931472, %v1103_v2  ;;  %v1105_v10 = vpop.eup %1104  ;;  %v776_v12 = vadd.f32 %v748_v6, %v720_v3 }
 0x1bb   :  { %v760_v16 = vmul.f32 0.6931472, %v1105_v10 }
 0x1bc   :  { %v1107_v13 = vpop.eup %1106  ;;  %v757_v15 = vsel %vm756_vm1, %v754_v8, %v751_v7  ;;  %780 = vst [vmem:[#allocation9] sm:$0xff] %v776_v12 }
 0x1bd   :  { %v769_v18 = vmul.f32 0.6931472, %v1107_v13  ;;  %v777_v20 = vadd.f32 %v757_v15, %v721_v11  ;;  %v766_v22 = vsel %vm765_vm2, %v763_v17, %v760_v16 }
 0x1be   :  { %v778_v24 = vadd.f32 %v766_v22, %v722_v14 }
 0x1bf   :  { %v775_v23 = vsel %vm774_vm3, %v772_v19, %v769_v18  ;;  %781 = vst [vmem:[#allocation9 + $0x8] sm:$0xff] %v777_v20 }
 0x1c0   :  { %v779_v25 = vadd.f32 %v775_v23, %v723_v21  ;;  %782 = vst [vmem:[#allocation9 + $0x10] sm:$0xff] %v778_v24 }
 0x1c2   :  { %783 = vst [vmem:[#allocation9 + $0x18] sm:$0xff] %v779_v25 }
 0x1c3   :  { %1207 = shalt.err (!%p1204_p8)
}
 0x1c4   :  { %s1208_s29 = scalar_lea.hbm %s1370_s6, 512 }
 0x1c5   :  { %p1209_p9 = scmp.ne.s32.totalorder %s1370_s6, %s1208_s29  ;;  %p1212_p10 = scmp.lt.u32.totalorder %s1208_s29, %s1370_s6 }
 0x1c7   :  { %p1214_p11 = pnand %p1212_p10, %p1209_p9 }
 0x1c9   :  { %1217 = shalt.err (!%p1214_p11)
}
 0x1ca   :  { %807 = dma.vmem_to_hbm [thread:$0]  %s802_s25, 512, %s1370_s6, [#allocation10], %s1227_s7, %s1227_s7, %s1228_s8  }
 0x1cb   :  { %1222 = dma.done.wait [#allocation4], 512  }
 0x1cc   :  { %1223 = vsyncadd [#allocation4], 4294966784 }
 0x1cd   :  { %1224 = dma.done.wait [#allocation10], 512  }
 0x1ce   :  { %1225 = vsyncadd [#allocation10], 4294966784 }
 0x1cf   :  { %814 = vsyncpa [#allocation3], 1 }
 0x1d0   :  { %815 = vsyncpa [#allocation6], 1 }
 0x1d1   :  { %816 = vsyncpa [#allocation4], 1 }
 0x1d2   :  { %817 = vsyncpa [#allocation10], 1 }

</bundles_post_ra>
